<compile_context>
chip_gen: v5e
topology: v5e:2x2
jax: 0.10.0
libtpu: 0.0.40
codegen_flags: <defaults>
</compile_context>

<pallas_src>
import functools

import jax
import jax.numpy as jnp
from jax import lax
from jax.experimental import pallas as pl
from jax.experimental.pallas import tpu as pltpu


_VMEM_LIMIT_BYTES = 48 * 1024 * 1024   # < v7x 64 MiB physical; above v5e/v6e scoped defaults
_VMEM_TILE_BUDGET = 28 * 1024 * 1024   # budget for the double-buffered x + out tiles (pass 2)
_MAX_N_TILE = 2048


def _choose_n_tile(n, c, x_bytes, out_bytes):
    """Pick the token-tile size nt (lane axis) and the padded N it implies.

    Pass 2 holds 2 double-buffered x tiles + 2 double-buffered out tiles of shape (C, nt);
    prefer a 128-multiple divisor of N within that budget, otherwise pad N up (masked last tile).
    """
    per_col = 2 * c * (x_bytes + out_bytes)
    cap = (_VMEM_TILE_BUDGET // max(per_col, 1)) // 128 * 128
    cap = max(128, min(_MAX_N_TILE, cap))
    if n <= cap:
        return n, n                         # single whole-N tile (full-dim block, no 128 constraint)
    t = cap
    while t >= 128:                         # largest 128-multiple divisor within budget
        if n % t == 0:
            return t, n
        t -= 128
    t = cap                                 # no clean divisor: largest tile with <=12.5% padding
    while t > 128:
        n_pad = ((n + t - 1) // t) * t
        if (n_pad - n) * 8 <= n_pad:
            return t, n_pad
        t -= 128
    return 128, ((n + 127) // 128) * 128


# --------------------------------------------------------------------------------------
# Pass 1: online k-softmax over N tiles, per-head context accumulated in VMEM scratch,
# finalize folds the context (and the softmax scale, pre-folded into Wout) into W_eff.
# --------------------------------------------------------------------------------------
def _context_kernel(x_ref, wkv_ref, wout_ref, weff_ref, ctx_acc, m_acc, l_acc,
                    *, heads, dim_head, hidden, n_valid):
    j = pl.program_id(1)

    @pl.when(j == 0)
    def _init():
        m_acc[...] = jnp.full(m_acc.shape, -jnp.inf, dtype=m_acc.dtype)
        l_acc[...] = jnp.zeros(l_acc.shape, dtype=l_acc.dtype)
        ctx_acc[...] = jnp.zeros(ctx_acc.shape, dtype=ctx_acc.dtype)

    x = x_ref[0].astype(jnp.bfloat16)                                    # (C, Nt)
    kv = jnp.dot(wkv_ref[...], x, preferred_element_type=jnp.float32)    # (2*hidden, Nt) f32
    nt = kv.shape[-1]
    k = kv[:hidden].reshape(heads, dim_head, nt)                         # (heads, d, Nt)
    v = kv[hidden:].reshape(heads, dim_head, nt)                         # (heads, d, Nt)

    if n_valid is not None:   # padded last tile: exclude padded columns from the k softmax
        col = lax.broadcasted_iota(jnp.int32, (1, 1, nt), 2) + j * nt
        k = jnp.where(col < n_valid, k, -jnp.inf)

    # online softmax of k over the (tiled) token axis, per (head, d) row
    m_prev = m_acc[...]                                                  # (heads, d, 1)
    m_new = jnp.maximum(m_prev, jnp.max(k, axis=-1, keepdims=True))
    alpha = jnp.exp(m_prev - m_new)
    p = jnp.exp(k - m_new)                                               # (heads, d, Nt)
    l_acc[...] = alpha * l_acc[...] + jnp.sum(p, axis=-1, keepdims=True)
    m_acc[...] = m_new

    # ctx_upd[h, d, e] = sum_n p[h, d, n] * v[h, e, n]
    ctx_upd = lax.dot_general(
        p.astype(jnp.bfloat16), v.astype(jnp.bfloat16),
        (((2,), (2,)), ((0,), (0,))),
        preferred_element_type=jnp.float32)                              # (heads, d, d)
    ctx_acc[...] = alpha * ctx_acc[...] + ctx_upd

    @pl.when(j == pl.num_programs(1) - 1)
    def _finalize():
        # exact normalization (once per batch), then fold the context into the out-projection:
        #   W_eff[c, h*d + d'] = sum_e Wout[c, h*d + e] * ctx_norm[h, d', e]
        ctx_n = ctx_acc[...] / l_acc[...]                                # (heads, d, d)
        wout = wout_ref[...]                                             # (C, hidden) bf16 (scale folded)
        parts = []
        for h in range(heads):
            w_h = wout[:, h * dim_head:(h + 1) * dim_head]               # (C, e)
            c_h = ctx_n[h].astype(jnp.bfloat16)                          # (d', e)
            parts.append(lax.dot_general(
                w_h, c_h, (((1,), (1,)), ((), ())),
                preferred_element_type=jnp.float32))                     # (C, d')
        weff_ref[0] = jnp.concatenate(parts, axis=-1)                    # (C, hidden) f32


# --------------------------------------------------------------------------------------
# Pass 2: q softmax over d, one folded matmul y = W_eff @ q_soft + b, RMSNorm over channels.
# --------------------------------------------------------------------------------------
def _output_kernel(x_ref, weff_ref, wq_ref, b_ref, g_ref, o_ref, *, heads, dim_head):
    x = x_ref[0].astype(jnp.bfloat16)                                    # (C, Nt)
    q = jnp.dot(wq_ref[...], x, preferred_element_type=jnp.float32)      # (hidden, Nt) f32
    nt = q.shape[-1]
    q = q.reshape(heads, dim_head, nt)

    # softmax over d (torch softmax(dim=-2)); the dim_head**-0.5 scale is pre-folded into W_eff.
    q_max = jnp.max(q, axis=1, keepdims=True)                            # (heads, 1, Nt)
    qe = jnp.exp(q - q_max)
    inv_den = pl.reciprocal(jnp.sum(qe, axis=1, keepdims=True), approx=True)
    q_soft = (qe * inv_den).astype(jnp.bfloat16).reshape(heads * dim_head, nt)

    weff = weff_ref[0].astype(jnp.bfloat16)                              # (C, hidden)
    y = jnp.dot(weff, q_soft, preferred_element_type=jnp.float32)        # (C, Nt) f32
    y = y + b_ref[...]                                                   # (C, 1) broadcast

    # RMSNorm over channels: F.normalize(y, dim=C) * g * sqrt(C); sqrt(C) pre-folded into g.
    ss = jnp.sum(y * y, axis=0, keepdims=True)                           # (1, Nt)
    y = y * lax.rsqrt(jnp.maximum(ss, 1e-24)) * g_ref[...]
    o_ref[0] = y.astype(o_ref.dtype)


def linear_attention_pallas(x_nchw, w_qkv, w_out, b_out, g, *, heads, dim_head, n_tile=None):
    """x_nchw: (B, C, H, W); w_qkv: (3*hidden, C); w_out: (C, hidden); b_out, g: (C,).
    Returns (B, C, H, W) in x's dtype, matching the PyTorch LinearAttention forward."""
    B, C, H, W = x_nchw.shape
    N = H * W
    hidden = heads * dim_head
    assert w_qkv.shape == (3 * hidden, C)
    assert w_out.shape == (C, hidden)
    scale = dim_head ** (-0.5)

    out_dtype = x_nchw.dtype
    x_bytes = jnp.dtype(x_nchw.dtype).itemsize
    out_bytes = jnp.dtype(out_dtype).itemsize

    if n_tile is None:
        nt, n_pad = _choose_n_tile(N, C, x_bytes, out_bytes)
    else:
        nt = int(n_tile)
        assert nt % 128 == 0 or nt >= N, "n_tile must be a multiple of 128 (or cover all of N)"
        n_pad = ((N + nt - 1) // nt) * nt
    needs_pad = n_pad != N
    n_tiles = n_pad // nt

    # channels-first token layout; x stays in its native dtype (cast to bf16 inside the kernels).
    x = x_nchw.reshape(B, C, N)
    if needs_pad:
        x = jnp.pad(x, ((0, 0), (0, 0), (0, n_pad - N)))

    wq = w_qkv[0 * hidden:1 * hidden].astype(jnp.bfloat16)               # (hidden, C)
    wkv = w_qkv[1 * hidden:3 * hidden].astype(jnp.bfloat16)              # (2*hidden, C) = [Wk; Wv]
    wout_s = (w_out * scale).astype(jnp.bfloat16)                        # softmax scale folded in
    b2 = b_out.reshape(C, 1).astype(jnp.float32)
    g2 = (g * (float(C) ** 0.5)).reshape(C, 1).astype(jnp.float32)       # RMSNorm sqrt(C) folded in

    # ---- pass 1: online k-softmax over N tiles -> per-batch effective out-projection W_eff ----
    weff = pl.pallas_call(
        functools.partial(_context_kernel, heads=heads, dim_head=dim_head,
                          hidden=hidden, n_valid=N if needs_pad else None),
        out_shape=jax.ShapeDtypeStruct((B, C, hidden), jnp.float32),
        grid_spec=pltpu.PrefetchScalarGridSpec(
            num_scalar_prefetch=0,
            grid=(B, n_tiles),
            in_specs=[
                pl.BlockSpec((1, C, nt), lambda b, j: (b, 0, j)),
                pl.BlockSpec((2 * hidden, C), lambda b, j: (0, 0)),
                pl.BlockSpec((C, hidden), lambda b, j: (0, 0)),
            ],
            out_specs=pl.BlockSpec((1, C, hidden), lambda b, j: (b, 0, 0)),
            scratch_shapes=[
                pltpu.VMEM((heads, dim_head, dim_head), jnp.float32),    # ctx accumulator
                pltpu.VMEM((heads, dim_head, 1), jnp.float32),           # running max m
                pltpu.VMEM((heads, dim_head, 1), jnp.float32),           # running sum-exp l
            ],
        ),
        compiler_params=pltpu.CompilerParams(
            dimension_semantics=("parallel", "arbitrary"),
            vmem_limit_bytes=_VMEM_LIMIT_BYTES),
    )(x, wkv, wout_s)

    # ---- pass 2: q softmax, single folded projection + bias + RMSNorm (fully parallel) ----
    out_tok = pl.pallas_call(
        functools.partial(_output_kernel, heads=heads, dim_head=dim_head),
        out_shape=jax.ShapeDtypeStruct((B, C, n_pad), out_dtype),
        grid_spec=pltpu.PrefetchScalarGridSpec(
            num_scalar_prefetch=0,
            grid=(B, n_tiles),
            in_specs=[
                pl.BlockSpec((1, C, nt), lambda b, j: (b, 0, j)),
                pl.BlockSpec((1, C, hidden), lambda b, j: (b, 0, 0)),
                pl.BlockSpec((hidden, C), lambda b, j: (0, 0)),
                pl.BlockSpec((C, 1), lambda b, j: (0, 0)),
                pl.BlockSpec((C, 1), lambda b, j: (0, 0)),
            ],
            out_specs=pl.BlockSpec((1, C, nt), lambda b, j: (b, 0, j)),
        ),
        compiler_params=pltpu.CompilerParams(
            dimension_semantics=("parallel", "parallel"),
            vmem_limit_bytes=_VMEM_LIMIT_BYTES),
    )(x, weff, wq, b2, g2)

    if needs_pad:
        out_tok = out_tok[:, :, :N]
    return out_tok.reshape(B, C, H, W)


def linear_attention_reference(x, w_qkv, w_out, b_out, g, *, heads, dim_head):
    """Pure-JAX f32 mirror of the PyTorch forward (NCHW), for verification."""
    B, C, H, W = x.shape
    N = H * W
    hidden = heads * dim_head
    scale = dim_head ** (-0.5)

    xf = x.reshape(B, C, N)
    qkv = jnp.einsum("oc,bcn->bon", w_qkv, xf)                           # (B, 3*hidden, N)
    q, k, v = jnp.split(qkv, 3, axis=1)
    q = q.reshape(B, heads, dim_head, N)
    k = k.reshape(B, heads, dim_head, N)
    v = v.reshape(B, heads, dim_head, N)

    q = jax.nn.softmax(q, axis=-2) * scale
    k = jax.nn.softmax(k, axis=-1)

    context = jnp.einsum("bhdn,bhen->bhde", k, v)
    out = jnp.einsum("bhde,bhdn->bhen", context, q)
    out = out.reshape(B, hidden, N)

    out2 = jnp.einsum("oc,bcn->bon", w_out, out) + b_out[None, :, None]
    norm = jnp.sqrt(jnp.sum(out2 * out2, axis=1, keepdims=True))
    normed = out2 / jnp.maximum(norm, 1e-12)
    y = normed * g[None, :, None] * (float(C) ** 0.5)
    return y.reshape(B, C, H, W)


if __name__ == "__main__":
    heads, dim_head = 2, 16
    hidden = heads * dim_head
    C = 8                                   # embed_dim

    key = jax.random.PRNGKey(0)
    kx, kq, ko, kb, kx2, kx3 = jax.random.split(key, 6)

    w_qkv = jax.random.normal(kq, (3 * hidden, C), dtype=jnp.float32) * 0.1   # Conv2d(C,3h,1,bias=False)
    w_out = jax.random.normal(ko, (C, hidden), dtype=jnp.float32) * 0.1       # Conv2d(h,C,1)
    b_out = jax.random.normal(kb, (C,), dtype=jnp.float32) * 0.1              # conv bias
    g = jnp.ones((C,), dtype=jnp.float32)                                     # RMSNorm gain

    # Test 1: small spatial (N=64, single N tile).
    B, H, W = 2, 8, 8
    x = jax.random.normal(kx, (B, C, H, W), dtype=jnp.float32)
    y = jax.block_until_ready(
        linear_attention_pallas(x, w_qkv, w_out, b_out, g, heads=heads, dim_head=dim_head))
    y_ref = linear_attention_reference(x, w_qkv, w_out, b_out, g, heads=heads, dim_head=dim_head)
    assert y.shape == (B, C, H, W)
    assert jnp.allclose(y, y_ref, rtol=5e-2, atol=5e-2), "mismatch vs reference (single tile)"

    # Test 2: N=256 with forced 128-wide tiles (exercises the online k-softmax reduction).
    B2, H2, W2 = 2, 16, 16
    x2 = jax.random.normal(kx2, (B2, C, H2, W2), dtype=jnp.float32)
    y2 = jax.block_until_ready(
        linear_attention_pallas(x2, w_qkv, w_out, b_out, g,
                                heads=heads, dim_head=dim_head, n_tile=128))
    y2_ref = linear_attention_reference(x2, w_qkv, w_out, b_out, g, heads=heads, dim_head=dim_head)
    assert y2.shape == (B2, C, H2, W2)
    assert jnp.allclose(y2, y2_ref, rtol=5e-2, atol=5e-2), "mismatch vs reference (tiled)"

    # Test 3: N=200 with 128-wide tiles -> padded + masked last tile path.
    B3, H3, W3 = 2, 10, 20
    x3 = jax.random.normal(kx3, (B3, C, H3, W3), dtype=jnp.float32)
    y3 = jax.block_until_ready(
        linear_attention_pallas(x3, w_qkv, w_out, b_out, g,
                                heads=heads, dim_head=dim_head, n_tile=128))
    y3_ref = linear_attention_reference(x3, w_qkv, w_out, b_out, g, heads=heads, dim_head=dim_head)
    assert y3.shape == (B3, C, H3, W3)
    assert jnp.allclose(y3, y3_ref, rtol=5e-2, atol=5e-2), "mismatch vs reference (padded/masked)"

    print("KERNEL_OK")
</pallas_src>

<mosaic_0001>
module attributes {stable_mosaic.version = 11 : i64} {
  func.func @_context_kernel(%arg0: i32, %arg1: i32, %arg2: memref<1x8x64xf32, #tpu.memory_space<vmem>>, %arg3: memref<64x8xbf16, #tpu.memory_space<vmem>>, %arg4: memref<8x32xbf16, #tpu.memory_space<vmem>>, %arg5: memref<1x8x32xf32, #tpu.memory_space<vmem>>, %arg6: memref<2x16x16xf32, #tpu.memory_space<vmem>>, %arg7: memref<2x16x1xf32, #tpu.memory_space<vmem>>, %arg8: memref<2x16x1xf32, #tpu.memory_space<vmem>>) attributes {dimension_semantics = [#tpu.dimension_semantics<parallel>, #tpu.dimension_semantics<arbitrary>], iteration_bounds = array<i64: 2, 1>, scalar_prefetch = 0 : i64, scratch_operands = 3 : i64, tpu.core_type = #tpu.core_type<tc>, window_params = [{transform_indices = @transform_0, window_bounds = array<i64: 1, 8, 64>}, {pipeline_mode = #tpu.pipeline_mode<synchronous>, transform_indices = @transform_1, window_bounds = array<i64: 64, 8>}, {pipeline_mode = #tpu.pipeline_mode<synchronous>, transform_indices = @transform_2, window_bounds = array<i64: 8, 32>}, {transform_indices = @transform_3, window_bounds = array<i64: 1, 8, 32>}]} {
    %c0_i32 = arith.constant 0 : i32
    %0 = arith.cmpi eq, %arg1, %c0_i32 : i32
    %1 = arith.extui %0 : i1 to i32
    %c0_i32_0 = arith.constant 0 : i32
    %2 = arith.cmpi ne, %1, %c0_i32_0 : i32
    scf.if %2 {
      %cst_28 = arith.constant 0xFF800000 : f32
      %39 = vector.broadcast %cst_28 : f32 to vector<2x16x1xf32>
      %c0_29 = arith.constant 0 : index
      %c0_30 = arith.constant 0 : index
      %c0_31 = arith.constant 0 : index
      %40 = vector.load %arg7[%c0_29, %c0_30, %c0_31] : memref<2x16x1xf32, #tpu.memory_space<vmem>>, vector<2x16x1xf32>
      tpu.vector_store %arg7[%c0_29, %c0_30, %c0_31], %39 {strides = array<i32>} : memref<2x16x1xf32, #tpu.memory_space<vmem>>, vector<2x16x1xf32>,
      %cst_32 = arith.constant 0.000000e+00 : f32
      %41 = vector.broadcast %cst_32 : f32 to vector<2x16x1xf32>
      %c0_33 = arith.constant 0 : index
      %c0_34 = arith.constant 0 : index
      %c0_35 = arith.constant 0 : index
      %42 = vector.load %arg8[%c0_33, %c0_34, %c0_35] : memref<2x16x1xf32, #tpu.memory_space<vmem>>, vector<2x16x1xf32>
      tpu.vector_store %arg8[%c0_33, %c0_34, %c0_35], %41 {strides = array<i32>} : memref<2x16x1xf32, #tpu.memory_space<vmem>>, vector<2x16x1xf32>,
      %cst_36 = arith.constant 0.000000e+00 : f32
      %43 = vector.broadcast %cst_36 : f32 to vector<2x16x16xf32>
      %c0_37 = arith.constant 0 : index
      %c0_38 = arith.constant 0 : index
      %c0_39 = arith.constant 0 : index
      %44 = vector.load %arg6[%c0_37, %c0_38, %c0_39] : memref<2x16x16xf32, #tpu.memory_space<vmem>>, vector<2x16x16xf32>
      tpu.vector_store %arg6[%c0_37, %c0_38, %c0_39], %43 {strides = array<i32>} : memref<2x16x16xf32, #tpu.memory_space<vmem>>, vector<2x16x16xf32>,
    } else {
    }
    %c0 = arith.constant 0 : index
    %c0_1 = arith.constant 0 : index
    %c0_2 = arith.constant 0 : index
    %3 = vector.load %arg2[%c0, %c0_1, %c0_2] : memref<1x8x64xf32, #tpu.memory_space<vmem>>, vector<1x8x64xf32>
    %4 = vector.shape_cast %3 : vector<1x8x64xf32> to vector<8x64xf32>
    %5 = arith.truncf %4 : vector<8x64xf32> to vector<8x64xbf16>
    %c0_3 = arith.constant 0 : index
    %c0_4 = arith.constant 0 : index
    %6 = vector.load %arg3[%c0_3, %c0_4] : memref<64x8xbf16, #tpu.memory_space<vmem>>, vector<64x8xbf16>
    %cst = arith.constant dense<0.000000e+00> : vector<64x64xf32>
    %7 = tpu.matmul %6, %5, %cst {dimension_numbers = #tpu.dot_dimension_numbers<[1], [0], [0], [1], [0, 0, 1, 1], [], []>} : vector<64x8xbf16>, vector<8x64xbf16>, vector<64x64xf32> -> vector<64x64xf32>
    %8 = vector.extract_strided_slice %7 {offsets = [0, 0], sizes = [32, 64], strides = [1, 1]} : vector<64x64xf32> to vector<32x64xf32>
    %9 = vector.shape_cast %8 : vector<32x64xf32> to vector<2x16x64xf32>
    %10 = vector.extract_strided_slice %7 {offsets = [32, 0], sizes = [32, 64], strides = [1, 1]} : vector<64x64xf32> to vector<32x64xf32>
    %11 = vector.shape_cast %10 : vector<32x64xf32> to vector<2x16x64xf32>
    %c0_5 = arith.constant 0 : index
    %c0_6 = arith.constant 0 : index
    %c0_7 = arith.constant 0 : index
    %12 = vector.load %arg7[%c0_5, %c0_6, %c0_7] : memref<2x16x1xf32, #tpu.memory_space<vmem>>, vector<2x16x1xf32>
    %cst_8 = arith.constant dense<0xFF800000> : vector<2x16xf32>
    %13 = vector.multi_reduction <maximumf>, %9, %cst_8 [2] : vector<2x16x64xf32> to vector<2x16xf32>
    %14 = vector.shape_cast %13 : vector<2x16xf32> to vector<2x16x1xf32>
    %15 = arith.maximumf %12, %14 : vector<2x16x1xf32>
    %16 = arith.subf %12, %15 : vector<2x16x1xf32>
    %17 = math.exp %16 : vector<2x16x1xf32>
    %18 = vector.broadcast %15 : vector<2x16x1xf32> to vector<2x16x64xf32>
    %19 = arith.subf %9, %18 : vector<2x16x64xf32>
    %20 = math.exp %19 : vector<2x16x64xf32>
    %c0_9 = arith.constant 0 : index
    %c0_10 = arith.constant 0 : index
    %c0_11 = arith.constant 0 : index
    %21 = vector.load %arg8[%c0_9, %c0_10, %c0_11] : memref<2x16x1xf32, #tpu.memory_space<vmem>>, vector<2x16x1xf32>
    %22 = arith.mulf %17, %21 : vector<2x16x1xf32>
    %cst_12 = arith.constant dense<0.000000e+00> : vector<2x16xf32>
    %23 = vector.multi_reduction <add>, %20, %cst_12 [2] : vector<2x16x64xf32> to vector<2x16xf32>
    %24 = vector.shape_cast %23 : vector<2x16xf32> to vector<2x16x1xf32>
    %25 = arith.addf %22, %24 : vector<2x16x1xf32>
    %c0_13 = arith.constant 0 : index
    %c0_14 = arith.constant 0 : index
    %c0_15 = arith.constant 0 : index
    %26 = vector.load %arg8[%c0_13, %c0_14, %c0_15] : memref<2x16x1xf32, #tpu.memory_space<vmem>>, vector<2x16x1xf32>
    tpu.vector_store %arg8[%c0_13, %c0_14, %c0_15], %25 {strides = array<i32>} : memref<2x16x1xf32, #tpu.memory_space<vmem>>, vector<2x16x1xf32>,
    %c0_16 = arith.constant 0 : index
    %c0_17 = arith.constant 0 : index
    %c0_18 = arith.constant 0 : index
    %27 = vector.load %arg7[%c0_16, %c0_17, %c0_18] : memref<2x16x1xf32, #tpu.memory_space<vmem>>, vector<2x16x1xf32>
    tpu.vector_store %arg7[%c0_16, %c0_17, %c0_18], %15 {strides = array<i32>} : memref<2x16x1xf32, #tpu.memory_space<vmem>>, vector<2x16x1xf32>,
    %28 = arith.truncf %20 : vector<2x16x64xf32> to vector<2x16x64xbf16>
    %29 = arith.truncf %11 : vector<2x16x64xf32> to vector<2x16x64xbf16>
    %cst_19 = arith.constant dense<0.000000e+00> : vector<2x16x16xf32>
    %30 = tpu.matmul %28, %29, %cst_19 {dimension_numbers = #tpu.dot_dimension_numbers<[2], [2], [1], [1], [0, 0, 0, 1, 1, 1], [0], [0]>} : vector<2x16x64xbf16>, vector<2x16x64xbf16>, vector<2x16x16xf32> -> vector<2x16x16xf32>
    %c0_20 = arith.constant 0 : index
    %c0_21 = arith.constant 0 : index
    %c0_22 = arith.constant 0 : index
    %31 = vector.load %arg6[%c0_20, %c0_21, %c0_22] : memref<2x16x16xf32, #tpu.memory_space<vmem>>, vector<2x16x16xf32>
    %32 = vector.broadcast %17 : vector<2x16x1xf32> to vector<2x16x16xf32>
    %33 = arith.mulf %32, %31 : vector<2x16x16xf32>
    %34 = arith.addf %33, %30 : vector<2x16x16xf32>
    %c0_23 = arith.constant 0 : index
    %c0_24 = arith.constant 0 : index
    %c0_25 = arith.constant 0 : index
    %35 = vector.load %arg6[%c0_23, %c0_24, %c0_25] : memref<2x16x16xf32, #tpu.memory_space<vmem>>, vector<2x16x16xf32>
    tpu.vector_store %arg6[%c0_23, %c0_24, %c0_25], %34 {strides = array<i32>} : memref<2x16x16xf32, #tpu.memory_space<vmem>>, vector<2x16x16xf32>,
    %c0_i32_26 = arith.constant 0 : i32
    %36 = arith.cmpi eq, %arg1, %c0_i32_26 : i32
    %37 = arith.extui %36 : i1 to i32
    %c0_i32_27 = arith.constant 0 : i32
    %38 = arith.cmpi ne, %37, %c0_i32_27 : i32
    scf.if %38 {
      %c0_28 = arith.constant 0 : index
      %c0_29 = arith.constant 0 : index
      %c0_30 = arith.constant 0 : index
      %39 = vector.load %arg6[%c0_28, %c0_29, %c0_30] : memref<2x16x16xf32, #tpu.memory_space<vmem>>, vector<2x16x16xf32>
      %c0_31 = arith.constant 0 : index
      %c0_32 = arith.constant 0 : index
      %c0_33 = arith.constant 0 : index
      %40 = vector.load %arg8[%c0_31, %c0_32, %c0_33] : memref<2x16x1xf32, #tpu.memory_space<vmem>>, vector<2x16x1xf32>
      %41 = vector.broadcast %40 : vector<2x16x1xf32> to vector<2x16x16xf32>
      %42 = arith.divf %39, %41 : vector<2x16x16xf32>
      %c0_34 = arith.constant 0 : index
      %c0_35 = arith.constant 0 : index
      %43 = vector.load %arg4[%c0_34, %c0_35] : memref<8x32xbf16, #tpu.memory_space<vmem>>, vector<8x32xbf16>
      %44 = vector.extract_strided_slice %43 {offsets = [0, 0], sizes = [8, 16], strides = [1, 1]} : vector<8x32xbf16> to vector<8x16xbf16>
      %45 = vector.extract_strided_slice %42 {offsets = [0, 0, 0], sizes = [1, 16, 16], strides = [1, 1, 1]} : vector<2x16x16xf32> to vector<1x16x16xf32>
      %46 = vector.shape_cast %45 : vector<1x16x16xf32> to vector<16x16xf32>
      %47 = arith.truncf %46 : vector<16x16xf32> to vector<16x16xbf16>
      %cst_36 = arith.constant dense<0.000000e+00> : vector<8x16xf32>
      %48 = tpu.matmul %44, %47, %cst_36 {dimension_numbers = #tpu.dot_dimension_numbers<[1], [1], [0], [0], [0, 0, 1, 0], [], []>} : vector<8x16xbf16>, vector<16x16xbf16>, vector<8x16xf32> -> vector<8x16xf32>
      %49 = vector.extract_strided_slice %43 {offsets = [0, 16], sizes = [8, 16], strides = [1, 1]} : vector<8x32xbf16> to vector<8x16xbf16>
      %50 = vector.extract_strided_slice %42 {offsets = [1, 0, 0], sizes = [1, 16, 16], strides = [1, 1, 1]} : vector<2x16x16xf32> to vector<1x16x16xf32>
      %51 = vector.shape_cast %50 : vector<1x16x16xf32> to vector<16x16xf32>
      %52 = arith.truncf %51 : vector<16x16xf32> to vector<16x16xbf16>
      %cst_37 = arith.constant dense<0.000000e+00> : vector<8x16xf32>
      %53 = tpu.matmul %49, %52, %cst_37 {dimension_numbers = #tpu.dot_dimension_numbers<[1], [1], [0], [0], [0, 0, 1, 0], [], []>} : vector<8x16xbf16>, vector<16x16xbf16>, vector<8x16xf32> -> vector<8x16xf32>
      %54 = tpu.concatenate %48, %53 in 1 : vector<8x16xf32>, vector<8x16xf32> -> vector<8x32xf32>
      %c0_38 = arith.constant 0 : index
      %c0_39 = arith.constant 0 : index
      %c0_40 = arith.constant 0 : index
      %55 = vector.load %arg5[%c0_38, %c0_39, %c0_40] : memref<1x8x32xf32, #tpu.memory_space<vmem>>, vector<1x8x32xf32>
      %56 = vector.shape_cast %55 : vector<1x8x32xf32> to vector<8x32xf32>
      %57 = vector.shape_cast %54 : vector<8x32xf32> to vector<1x8x32xf32>
      tpu.vector_store %arg5[%c0_38, %c0_39, %c0_40], %57 {strides = array<i32>} : memref<1x8x32xf32, #tpu.memory_space<vmem>>, vector<1x8x32xf32>,
    } else {
    }
    return
  }
  func.func @transform_0(%arg0: i32, %arg1: i32) -> (i32, i32, i32) {
    %c0_i32 = arith.constant 0 : i32
    %c0_i32_0 = arith.constant 0 : i32
    return %arg0, %c0_i32, %arg1 : i32, i32, i32
  }
  func.func @transform_1(%arg0: i32, %arg1: i32) -> (i32, i32) {
    %c0_i32 = arith.constant 0 : i32
    %c0_i32_0 = arith.constant 0 : i32
    %c0_i32_1 = arith.constant 0 : i32
    return %c0_i32, %c0_i32_0 : i32, i32
  }
  func.func @transform_2(%arg0: i32, %arg1: i32) -> (i32, i32) {
    %c0_i32 = arith.constant 0 : i32
    %c0_i32_0 = arith.constant 0 : i32
    %c0_i32_1 = arith.constant 0 : i32
    return %c0_i32, %c0_i32_0 : i32, i32
  }
  func.func @transform_3(%arg0: i32, %arg1: i32) -> (i32, i32, i32) {
    %c0_i32 = arith.constant 0 : i32
    %c0_i32_0 = arith.constant 0 : i32
    %c0_i32_1 = arith.constant 0 : i32
    return %arg0, %c0_i32, %c0_i32_0 : i32, i32, i32
  }
}

</mosaic_0001>

<bundles_post_ra>
// kernel: tpu_custom_call.1
= control target key start
LH: loop header
LB: loop body
LE: loop exit
PB: predicated region body
PF: predicated region fallthrough
CT: control target
= control target key end

     0   :  { %8 = vsyncpa [#allocation6], 0  ;;  %s1208_s0 = inlined_call_operand.vmem [shape: f32[2,8,64], index: 0, kind: input, shape index: {}]   ;;  %s1209_s1 = inlined_call_operand.vmem [shape: bf16[64,8], index: 1, kind: input, shape index: {}]   ;;  %s1210_s2 = inlined_call_operand.vmem [shape: bf16[8,32], index: 2, kind: input, shape index: {}]   ;;  %s1211_s3 = inlined_call_operand.hbm [shape: f32[2,8,32], index: 3, kind: output, shape index: {}]  }
   0x1   :  { %10 = vsyncpa [#allocation6 + $0x1], 0  ;;  %s949_s12 = smov 0   ;;  %s951_s13 = smov 0  }
   0x2   :  { %s953_s14 = smov 0   ;;  %s955_s15 = smov 0  }
   0x3   :  { %s957_s16 = smov 0   ;;  %s959_s17 = smov 0  }
   0x4 LB: > { %s717_s18 = sadd.s32 4294967295, %s922_s17   ;;  %s718_s19 = sadd.s32 4294967294, %s922_s17   ;;  %s922_s17 = sphi %s959_s17, %s16_s17   ;;  %s918_s16 = sphi %s957_s16, %s1220_s16   ;;  %s914_s15 = sphi %s955_s15, %s1219_s15   ;;  %s910_s14 = sphi %s953_s14, %s1218_s14   ;;  %s906_s13 = sphi %s951_s13, %s1217_s13   ;;  %s902_s12 = sphi %s949_s12, %s1216_s12  }
   0x5   : > { %s28_s20 = sadd.s32 1, %s918_s16  ;;  %s105_s21 = sadd.s32 1, %s910_s14 }
   0x6   : > { %p30_p0 = scmp.ge.s32.totalorder %s28_s20, 2  ;;  %p115_p1 = scmp.ne.s32.totalorder %s910_s14, %s906_s13 }
   0x7   : > { %p116_p2 = scmp.eq.s32.totalorder %s717_s18, 1  ;;  %p121_p3 = scmp.ne.s32.totalorder %s906_s13, %s902_s12 }
   0x8   : > { %s1222_s20 = smov (%p30_p0, %s28_s20), 0  ;;  %p122_p5 = scmp.eq.s32.totalorder %s718_s19, 1 }
   0x9   : > { %p989_p4 = por %p116_p2, %p115_p1  ;;  %s102_s23 = ssub.s32 %s918_s16, %s1222_s20 }
   0xa   : > { %p721_p6 = scmp.ge.s32.totalorder %s922_s17, 1  ;;  %p103_p7 = scmp.eq.s32.totalorder %s102_s23, 0 }
   0xb   : > { %p996_p8 = por %p122_p5, %p121_p3  ;;  %p156_p9 = scmp.lt.s32.totalorder %s922_s17, 3 }
   0xc   : > { %s1002_s25 = scalar_select %p103_p7, %s910_s14, %s105_s21  }
   0xd   : > { %p157_p10 = pnand %p721_p6, %p156_p9 }
   0xe   : > { %p182_p11 = scmp.lt.s32.totalorder (!%p157_p10), %s914_s15, 1  ;;  %s927_s21 = smov (!%p157_p10), 112  }
   0xf   : > { %160 = sbr.rel (%p157_p10) target bundleno = 918 (0x396), region = 32  ;;  %s928_s23 = smov (!%p157_p10), 16  }
  0x10   : > { %s749_s28 = sshll.u32 (!%p157_p10), %s914_s15, 3  ;;  %s864_s18 = scalar_lea.hbm (!%p157_p10), %s1211_s3, 16 }
  0x11   : > { %s642_s4 = scalar_lea.hbm (!%p157_p10), %s1211_s3, %s749_s28 }
  0x12   : > { %s646_s7 = sshll.u32 (!%p157_p10), %s642_s4, 4  ;;  %s647_s7 = int_to_ptr.hbm [resolvable:$true] %s646_s7 }
  0x13   : > { %s858_s9 = sshra.s32 (!%p157_p10), %s647_s7, 4  ;;  %s859_s9 = int_to_ptr.hbm [resolvable:$true] %s858_s9 }
  0x14   : > { %s183_s26 = scalar_select %p182_p11, %s914_s15, 1  ;;  %vm251_vm0 = vcmask 1043456   ;;  %v752_v3 = vld [vmem:[%s1209_s1] sm:$0xff]  ;;  %vm238_vm1 = vcmask 64512   ;;  %v753_v4 = vld [vmem:[%s1209_s1 + $0x8] sm:$0xff]  ;;  %v755_v5 = vld [vmem:[%s1209_s1 + $0x18] sm:$0xff] }
  0x15   : > { %v754_v6 = vld [vmem:[%s1209_s1 + $0x10] sm:$0xff]  ;;  %vm194_vm2 = vcmask 7168   ;;  %v924_v7 = vmov -inf   ;;  %vm288_vm3 = vcmask 523264   ;;  %v925_v16 = vmov 0   ;;  %s860_s10 = scalar_lea.hbm %s859_s9, 8  ;;  %p865_p1 = scmp.lt.s32.totalorder %s859_s9, %s1211_s3 }
  0x16   : > { %s723_s27 = sshll.u32 %s183_s26, 3  ;;  %195 = vst.msk [vmem:[#allocation3] sm:$0xff] %vm194_vm2, %v924_v7  ;;  %818 = vset.pattern.permute.xlu0 %v925_v16  ;;  %819 = vset.pattern.permute.xlu1 %v925_v16  ;;  %v926_v17 = vmov 0.0   ;;  %vm203_vm4 = vcmask 130048   ;;  %s179_s26 = sand.u32 1, %s906_s13  }
  0x17   : > { %s188_s30 = scalar_lea.vmem %s1208_s0, %s723_s27  ;;  %196 = vst.msk [vmem:[#allocation3 + $0x8] sm:$0xff] %vm194_vm2, %v924_v7  ;;  %817 = vset.pattern.permute.xlu2 %v925_v16  ;;  %s722_s27 = sshll.u32 %s179_s26, 3 }
  0x18   : > { %v208_v0 = vld [vmem:[%s188_s30] sm:$0xff]  ;;  %197 = vst.msk [vmem:[#allocation3 + $0x10] sm:$0xff] %vm194_vm2, %v924_v7  ;;  %s181_s5 = scalar_lea.vmem [#allocation5], %s722_s27  ;;  %s632_s8 = scalar_lea.sflag [#allocation6], %s179_s26 }
  0x19   : > { %v209_v1 = vpack.c.bf16 %v208_v0, %v208_v0  ;;  %198 = vst.msk [vmem:[#allocation3 + $0x18] sm:$0xff] %vm194_vm2, %v924_v7  ;;  %s644_s6 = sshll.u32 %s181_s5, 4  ;;  %p861_p12 = scmp.ne.s32.totalorder %s859_s9, %s860_s10  ;;  %s645_s6 = int_to_ptr.vmem [resolvable:$true] %s644_s6 }
  0x1a   : > { %201 = vst.msk [vmem:[#allocation4 + $0x10] sm:$0xff] %vm194_vm2, %v926_v17  ;;  %p866_p2 = scmp.lt.s32.totalorder %s864_s18, %s860_s10 }
  0x1b   : > { %v253_v2 = vsel %vm251_vm0, %v209_v1, 0  ;;  %199 = vst.msk [vmem:[#allocation4] sm:$0xff] %vm194_vm2, %v926_v17  ;;  %p862_p13 = pnand %p861_p12, %p989_p4 }
  0x1c   : > { %262 = vmatpush.bf16.msra.mxu0 %v253_v2  ;;  %756 = vmatpush.bf16.msra.mxu2 %v253_v2  ;;  %200 = vst.msk [vmem:[#allocation4 + $0x8] sm:$0xff] %vm194_vm2, %v926_v17  ;;  %p867_p3 = por %p866_p2, %p865_p1 }
  0x1d   : > { %202 = vst.msk [vmem:[#allocation4 + $0x18] sm:$0xff] %vm194_vm2, %v926_v17  ;;  %v1046_v18 = vld [vmem:[#allocation3] sm:$0xff]  ;;  %p863_p0 = pneg %p862_p13 }
  0x1e   : > { %v1056_v22 = vld [vmem:[#allocation3 + $0x8] sm:$0xff]  ;;  %206 = vst.msk [vmem:[#allocation2 + $0x10] sm:$0xff] %vm203_vm4, %v926_v17 }
  0x1f   : > { %740 = vmatmul.msk.bf16.vlgmr.msra.gmra.mxu0 %vm238_vm1, %v752_v3  ;;  %743 = vmatmul.msk.bf16.vlgmr.msra.gmra.mxu2 %vm238_vm1, %v755_v5  ;;  %v1066_v26 = vld [vmem:[#allocation3 + $0x10] sm:$0xff]  ;;  %204 = vst.msk [vmem:[#allocation2] sm:$0xff] %vm203_vm4, %v926_v17  ;;  %p868_p5 = pnand %p867_p3, %p863_p0 }
  0x20   : > { %v1076_v30 = vld [vmem:[#allocation3 + $0x18] sm:$0xff]  ;;  %205 = vst.msk [vmem:[#allocation2 + $0x8] sm:$0xff] %vm203_vm4, %v926_v17 }
  0x21   : > { %207 = vst.msk [vmem:[#allocation2 + $0x18] sm:$0xff] %vm203_vm4, %v926_v17 }
  0x2f   : > { %741 = vmatmul.msk.bf16.gmra.mxu0 %vm238_vm1, %v753_v4 }
  0x3f   : > { %742 = vmatmul.msk.bf16.gmra.mxu0 %vm238_vm1, %v754_v6 }
  0x9c   : > { %v1025_v8 = vpop.f32.mrf.mxu0 }
  0x9d   : > { %v289_v9 = vsel %vm288_vm3, %v1025_v8, -inf }
  0x9e   : > { %290 = vmax.xlane.f32.xlu1 %v289_v9 }
  0xa2   : > { %v279_v34 = vpop.f32.mrf.mxu2 }
  0xa3   : > { %v388_v35 = vpack.c.bf16 %v279_v34, %v279_v34 }
  0xa4   : > { %v1029_v10 = vpop.f32.mrf.mxu0 }
  0xa5   : > { %v292_v11 = vsel %vm288_vm3, %v1029_v10, -inf  ;;  %v427_v39 = vunpack.c.l.b16 %v388_v35 }
  0xa6   : > { %293 = vmax.xlane.f32.xlu1 %v292_v11 }
  0xaa   : > { %v281_v37 = vpop.f32.mrf.mxu2 }
  0xab   : > { %v389_v38 = vpack.c.bf16 %v281_v37, %v281_v37 }
  0xac   : > { %v269_v12 = vpop.f32.mrf.mxu0 }
  0xad   : > { %v295_v13 = vsel %vm288_vm3, %v269_v12, -inf  ;;  %v428_v40 = vunpack.c.l.b16 %v389_v38 }
  0xae   : > { %296 = vmax.xlane.f32.xlu0 %v295_v13 }
  0xaf   : > { %v429_v41 = vpack.c.b16 %v428_v40, %v427_v39 }
  0xb1   : > { %v434_v42 = vsel %vm288_vm3, %v429_v41, 0  ;;  %v1112_v41 = vld [vmem:[%s1210_s2] sm:$0xf] }
  0xb2   : > { %443 = vmatpush.bf16.xpose.msrb.mxu2 %v434_v42 }
  0xb4   : > { %v1034_v14 = vpop.f32.mrf.mxu0 }
  0xb5   : > { %v298_v15 = vsel %vm288_vm3, %v1034_v14, -inf }
  0xb6   : > { %299 = vmax.xlane.f32.xlu0 %v298_v15 }
  0xbc   : > { %v274_v36 = vpop.f32.mrf.mxu0 }
  0xbd   : > { %v386_v44 = vpack.c.bf16 %v274_v36, %v274_v36 }
  0xbf   : > { %v397_v46 = vunpack.c.l.b16 %v386_v44 }
  0xc4   : > { %v276_v43 = vpop.f32.mrf.mxu0 }
  0xc5   : > { %v387_v45 = vpack.c.bf16 %v276_v43, %v276_v43 }
  0xc7   : > { %v398_v47 = vunpack.c.l.b16 %v387_v45  ;;  %v601_v45 = vunpack.c.l.b16 %v1112_v41 }
  0xc9   : > { %v399_v48 = vpack.c.b16 %v398_v47, %v397_v46  ;;  %v602_v46 = vpack.c.b16 %v601_v45, %v601_v45 }
  0xcb   : > { %v404_v49 = vsel %vm288_vm3, %v399_v48, 0 }
  0xcc   : > { %413 = vmatpush.bf16.xpose.msra.mxu1 %v404_v49  ;;  %v452_v49 = vld [vmem:[#allocation2 + $0x10] sm:$0xff] }
 0x111   : > { %v291_v19 = vpop.xlane.xlu1 %290 }
 0x112   : > { %v1049_v20 = vmax.f32 %v1046_v18, %v291_v19 }
 0x114   : > { %v305_v21 = vsub.f32 %v1046_v18, %v1049_v20  ;;  %378 = vst.msk [vmem:[#allocation3] sm:$0xff] %vm194_vm2, %v1049_v20  ;;  %319 = vperm.xlu0 %818, %v1049_v20  }
 0x119   : > { %v294_v23 = vpop.xlane.xlu1 %293 }
 0x11a   : > { %v1059_v24 = vmax.f32 %v1056_v22, %v294_v23  ;;  %v309_v23 = vmul.f32 1.442695, %v305_v21 }
 0x11c   : > { %v306_v25 = vsub.f32 %v1056_v22, %v1059_v24  ;;  %379 = vst.msk [vmem:[#allocation3 + $0x8] sm:$0xff] %vm194_vm2, %v1059_v24  ;;  %324 = vperm.xlu1 %819, %v1059_v24   ;;  %v350_v22 = vld [vmem:[#allocation4 + $0x8] sm:$0xff] }
 0x11e   : > { %v311_v35 = vmul.f32 1.442695, %v306_v25 }
 0x121   : > { %v297_v27 = vpop.xlane.xlu0 %296 }
 0x122   : > { %v1069_v28 = vmax.f32 %v1066_v26, %v297_v27 }
 0x124   : > { %v307_v29 = vsub.f32 %v1066_v26, %v1069_v28  ;;  %380 = vst.msk [vmem:[#allocation3 + $0x10] sm:$0xff] %vm194_vm2, %v1069_v28  ;;  %329 = vperm.xlu2 %817, %v1069_v28   ;;  %v352_v28 = vld [vmem:[#allocation4 + $0x18] sm:$0xff] }
 0x126   : > { %v313_v16 = vmul.f32 1.442695, %v307_v29 }
 0x129   : > { %v300_v31 = vpop.xlane.xlu0 %299 }
 0x12a   : > { %v1079_v32 = vmax.f32 %v1076_v30, %v300_v31 }
 0x12c   : > { %v308_v33 = vsub.f32 %v1076_v30, %v1079_v32  ;;  %381 = vst.msk [vmem:[#allocation3 + $0x18] sm:$0xff] %vm194_vm2, %v1079_v32  ;;  %334 = vperm.xlu2 %817, %v1079_v32   ;;  %v351_v30 = vld [vmem:[#allocation4 + $0x10] sm:$0xff] }
 0x12e   : > { %v315_v19 = vmul.f32 1.442695, %v308_v33  ;;  %v349_v33 = vld [vmem:[#allocation4] sm:$0xff] }
 0x17e   : > { %v330_v50 = vpop.permute.xlu2 %329 }
 0x17f   : > { %v339_v51 = vsub.f32 %v269_v12, %v330_v50 }
 0x181   : > { %v345_v52 = vmul.f32 1.442695, %v339_v51 }
 0x183   : > { %820 = vpow2.f32 %v345_v52 }
 0x186   : > { %v335_v53 = vpop.permute.xlu2 %334  ;;  %v320_v54 = vpop.permute.xlu0 %319 }
 0x187   : > { %v340_v55 = vsub.f32 %v1034_v14, %v335_v53  ;;  %v337_v56 = vsub.f32 %v1025_v8, %v320_v54  ;;  %v453_v54 = vld [vmem:[#allocation2 + $0x18] sm:$0xff] }
 0x189   : > { %v821_v57 = vpop.eup %820  ;;  %v347_v58 = vmul.f32 1.442695, %v340_v55  ;;  %v341_v59 = vmul.f32 1.442695, %v337_v56 }
 0x18a   : > { %v363_v60 = vsel %vm288_vm3, %v821_v57, 0.0  ;;  %v384_v63 = vpack.c.bf16 %v821_v57, %v821_v57 }
 0x18b   : > { %822 = vpow2.f32 %v347_v58  ;;  %364 = vadd.xlane.f32.xlu2 %v363_v60 }
 0x18c   : > { %824 = vpow2.f32 %v341_v59  ;;  %v422_v6 = vunpack.c.l.b16 %v384_v63 }
 0x18e   : > { %v325_v61 = vpop.permute.xlu1 %324 }
 0x18f   : > { %v338_v62 = vsub.f32 %v1029_v10, %v325_v61  ;;  %v450_v61 = vld [vmem:[#allocation2] sm:$0xff] }
 0x191   : > { %v823_v0 = vpop.eup %822  ;;  %v343_v1 = vmul.f32 1.442695, %v338_v62 }
 0x192   : > { %v825_v2 = vpop.eup %824  ;;  %v385_v3 = vpack.c.bf16 %v823_v0, %v823_v0  ;;  %v366_v4 = vsel %vm288_vm3, %v823_v0, 0.0 }
 0x193   : > { %826 = vpow2.f32 %v343_v1  ;;  %367 = vadd.xlane.f32.xlu1 %v366_v4  ;;  %v357_v5 = vsel %vm288_vm3, %v825_v2, 0.0  ;;  %v382_v9 = vpack.c.bf16 %v825_v2, %v825_v2 }
 0x194   : > { %v423_v7 = vunpack.c.l.b16 %v385_v3  ;;  %358 = vadd.xlane.f32.xlu0 %v357_v5  ;;  %828 = vpow2.f32 %v313_v16 }
 0x195   : > { %v392_v13 = vunpack.c.l.b16 %v382_v9  ;;  %830 = vpow2.f32 %v315_v19 }
 0x196   : > { %v424_v8 = vpack.c.b16 %v423_v7, %v422_v6  ;;  %832 = vpow2.f32 %v309_v23 }
 0x197   : > { %834 = vpow2.f32 %v311_v35 }
 0x198   : > { %745 = vmatmul.msk.bf16.vlgmr.msrb.gmra.mxu2 %vm288_vm3, %v424_v8 }
 0x199   : > { %v827_v11 = vpop.eup %826 }
 0x19a   : > { %v360_v10 = vsel %vm288_vm3, %v827_v11, 0.0  ;;  %v383_v12 = vpack.c.bf16 %v827_v11, %v827_v11  ;;  %v829_v27 = vpop.eup %828 }
 0x19b   : > { %361 = vadd.xlane.f32.xlu2 %v360_v10  ;;  %v355_v31 = vmul.f32 %v829_v27, %v351_v30  ;;  %v831_v26 = vpop.eup %830 }
 0x19c   : > { %v393_v14 = vunpack.c.l.b16 %v383_v12  ;;  %v833_v29 = vpop.eup %832  ;;  %v356_v18 = vmul.f32 %v831_v26, %v352_v28 }
 0x19d   : > { %v353_v21 = vmul.f32 %v833_v29, %v349_v33  ;;  %v835_v40 = vpop.eup %834 }
 0x19e   : > { %v394_v15 = vpack.c.b16 %v393_v14, %v392_v13  ;;  %v354_v24 = vmul.f32 %v835_v40, %v350_v22 }
 0x1a0   : > { %744 = vmatmul.msk.bf16.vlgmr.msra.gmra.mxu1 %vm288_vm3, %v394_v15 }
 0x1fe   : > { %v365_v32 = vpop.xlane.xlu2 %364 }
 0x1ff   : > { %v371_v34 = vadd.f32 %v365_v32, %v355_v31 }
 0x201   : > { %376 = vst.msk [vmem:[#allocation4 + $0x10] sm:$0xff] %vm194_vm2, %v371_v34  ;;  %v451_v34 = vld [vmem:[#allocation2 + $0x8] sm:$0xff] }
 0x206   : > { %v368_v20 = vpop.xlane.xlu1 %367 }
 0x207   : > { %v372_v36 = vadd.f32 %v368_v20, %v356_v18  ;;  %v359_v37 = vpop.xlane.xlu0 %358 }
 0x208   : > { %v369_v38 = vadd.f32 %v359_v37, %v353_v21  ;;  %v496_v39 = vld [vmem:[#allocation4 + $0x10] sm:$0xff] }
 0x209   : > { %377 = vst.msk [vmem:[#allocation4 + $0x18] sm:$0xff] %vm194_vm2, %v372_v36  ;;  %510 = vperm.xlu2 %817, %v496_v39  }
 0x20a   : > { %374 = vst.msk [vmem:[#allocation4] sm:$0xff] %vm194_vm2, %v369_v38 }
 0x20e   : > { %v362_v25 = vpop.xlane.xlu2 %361 }
 0x20f   : > { %v370_v42 = vadd.f32 %v362_v25, %v354_v24 }
 0x210   : > { %v497_v43 = vld [vmem:[#allocation4 + $0x18] sm:$0xff] }
 0x211   : > { %375 = vst.msk [vmem:[#allocation4 + $0x8] sm:$0xff] %vm194_vm2, %v370_v42  ;;  %466 = vperm.xlu2 %817, %v829_v27   ;;  %515 = vperm.xlu1 %819, %v497_v43   ;;  %v494_v44 = vld [vmem:[#allocation4] sm:$0xff] }
 0x212   : > { %500 = vperm.xlu0 %818, %v494_v44  }
 0x218   : > { %v495_v47 = vld [vmem:[#allocation4 + $0x8] sm:$0xff] }
 0x219   : > { %471 = vperm.xlu2 %817, %v831_v26   ;;  %603 = vrot.lane.b32.xlu1 %v602_v46, %s927_s21 }
 0x21b   : > { %v445_v50 = vpop.f32.mrf.mxu2 }
 0x21d   : > { %v415_v2 = vpop.f32.mrf.mxu1 }
 0x221   : > { %505 = vperm.xlu2 %817, %v495_v47   ;;  %461 = vperm.xlu1 %819, %v835_v40  }
 0x223   : > { %v447_v57 = vpop.f32.mrf.mxu2 }
 0x225   : > { %v417_v22 = vpop.f32.mrf.mxu1 }
 0x229   : > { %456 = vperm.xlu2 %817, %v833_v29  }
 0x263   : > { %v511_v48 = vpop.permute.xlu2 %510 }
 0x264   : > { %836 = vrcp.f32 %v511_v48  ;;  %vm553_vm6 = vweird.f32 %v511_v48  ;;  %v559_v15 = vand.u32 2147483648, %v511_v48  ;;  %v557_v27 = vand.u32 2147483647, %v511_v48 }
 0x266   : > { %v560_v28 = vor.u32 1.1754944e-38, %v559_v15  ;;  %vm558_vm11 = vcmp.eq.f32.partialorder %v557_v27, 8.507059e+37 }
 0x26a   : > { %v837_v60 = vpop.eup %836 }
 0x26b   : > { %v467_v51 = vpop.permute.xlu2 %466  ;;  %v549_v17 = vmul.f32 %v837_v60, %v511_v48  ;;  %vm554_vm5 = vweird.f32 %v837_v60 }
 0x26c   : > { %v476_v52 = vmul.f32 %v467_v51, %v452_v49  ;;  %vm1143_vm8 = vmor %vm553_vm6, %vm554_vm5  ;;  %vm629_vm6 = vcmask 261120  }
 0x26d   : > { %v550_v3 = vsub.f32 1.0, %v549_v17 }
 0x26e   : > { %v480_v53 = vadd.f32 %v476_v52, %v445_v50 }
 0x26f   : > { %v551_v6 = vmul.f32 %v837_v60, %v550_v3 }
 0x270   : > { %485 = vst.msk [vmem:[#allocation2 + $0x10] sm:$0xff] %vm203_vm4, %v480_v53 }
 0x271   : > { %v552_v14 = vadd.f32 %v837_v60, %v551_v6 }
 0x273   : > { %v472_v55 = vpop.permute.xlu2 %471  ;;  %v556_v35 = vsel %vm1143_vm8, %v837_v60, %v552_v14 }
 0x274   : > { %v477_v56 = vmul.f32 %v472_v55, %v453_v54  ;;  %v561_v39 = vsel %vm558_vm11, %v560_v28, %v556_v35 }
 0x276   : > { %v481_v58 = vadd.f32 %v477_v56, %v447_v57 }
 0x277   : > { %v492_v18 = vld [vmem:[#allocation2 + $0x10] sm:$0xff] }
 0x278   : > { %486 = vst.msk [vmem:[#allocation2 + $0x18] sm:$0xff] %vm203_vm4, %v481_v58  ;;  %v562_v24 = vmul.f32 %v561_v39, %v492_v18 }
 0x27b   : > { %v1126_v59 = vpop.permute.xlu2 %505 }
 0x27c   : > { %838 = vrcp.f32 %v1126_v59  ;;  %v544_v48 = vand.u32 2147483648, %v1126_v59  ;;  %vm538_vm1 = vweird.f32 %v1126_v59  ;;  %v542_v51 = vand.u32 2147483647, %v1126_v59 }
 0x27e   : > { %v545_v54 = vor.u32 1.1754944e-38, %v544_v48  ;;  %vm543_vm5 = vcmp.eq.f32.partialorder %v542_v51, 8.507059e+37 }
 0x27f   : > { %v493_v38 = vld [vmem:[#allocation2 + $0x18] sm:$0xff] }
 0x282   : > { %v1133_v5 = vpop.eup %838 }
 0x283   : > { %v457_v62 = vpop.permute.xlu2 %456  ;;  %v516_v63 = vpop.permute.xlu1 %515  ;;  %v534_v10 = vmul.f32 %v1133_v5, %v1126_v59  ;;  %vm539_vm15 = vweird.f32 %v1133_v5 }
 0x284   : > { %v474_v0 = vmul.f32 %v457_v62, %v450_v61  ;;  %840 = vrcp.f32 %v516_v63  ;;  %v1129_v1 = vpop.permute.xlu0 %500  ;;  %v574_v16 = vand.u32 2147483648, %v516_v63  ;;  %v572_v30 = vand.u32 2147483647, %v516_v63  ;;  %vm540_vm2 = vmor %vm538_vm1, %vm539_vm15 }
 0x285   : > { %842 = vrcp.f32 %v1129_v1  ;;  %v535_v32 = vsub.f32 1.0, %v534_v10  ;;  %vm568_vm9 = vweird.f32 %v516_v63  ;;  %v529_v44 = vand.u32 2147483648, %v1129_v1 }
 0x286   : > { %v478_v4 = vadd.f32 %v474_v0, %v415_v2  ;;  %v575_v29 = vor.u32 1.1754944e-38, %v574_v16  ;;  %vm573_vm12 = vcmp.eq.f32.partialorder %v572_v30, 8.507059e+37  ;;  %vm523_vm14 = vweird.f32 %v1129_v1 }
 0x287   : > { %v536_v36 = vmul.f32 %v1133_v5, %v535_v32  ;;  %v527_v46 = vand.u32 2147483647, %v1129_v1  ;;  %v530_v52 = vor.u32 1.1754944e-38, %v529_v44 }
 0x288   : > { %483 = vst.msk [vmem:[#allocation2] sm:$0xff] %vm203_vm4, %v478_v4 }
 0x289   : > { %v537_v47 = vadd.f32 %v1133_v5, %v536_v36  ;;  %vm528_vm3 = vcmp.eq.f32.partialorder %v527_v46, 8.507059e+37 }
 0x28a   : > { %v841_v7 = vpop.eup %840 }
 0x28b   : > { %v1135_v8 = vpop.eup %842  ;;  %v564_v9 = vmul.f32 %v841_v7, %v516_v63  ;;  %v1137_v11 = vpop.permute.xlu1 %603  ;;  %vm569_vm7 = vweird.f32 %v841_v7  ;;  %v541_v53 = vsel %vm540_vm2, %v1133_v5, %v537_v47 }
 0x28c   : > { %v519_v12 = vmul.f32 %v1135_v8, %v1129_v1  ;;  %vm570_vm10 = vmor %vm568_vm9, %vm569_vm7  ;;  %vm524_vm13 = vweird.f32 %v1135_v8  ;;  %v546_v58 = vsel %vm543_vm5, %v545_v54, %v541_v53 }
 0x28d   : > { %v565_v13 = vsub.f32 1.0, %v564_v9  ;;  %vm525_vm0 = vmor %vm523_vm14, %vm524_vm13 }
 0x28e   : > { %v520_v19 = vsub.f32 1.0, %v519_v12 }
 0x28f   : > { %v566_v23 = vmul.f32 %v841_v7, %v565_v13  ;;  %v490_v56 = vld [vmem:[#allocation2] sm:$0xff] }
 0x290   : > { %v521_v33 = vmul.f32 %v1135_v8, %v520_v19 }
 0x291   : > { %v567_v26 = vadd.f32 %v841_v7, %v566_v23 }
 0x292   : > { %v522_v43 = vadd.f32 %v1135_v8, %v521_v33 }
 0x293   : > { %v462_v20 = vpop.permute.xlu1 %461  ;;  %v571_v21 = vsel %vm570_vm10, %v841_v7, %v567_v26 }
 0x294   : > { %v475_v37 = vmul.f32 %v462_v20, %v451_v34  ;;  %v576_v40 = vsel %vm573_vm12, %v575_v29, %v571_v21  ;;  %v526_v50 = vsel %vm525_vm0, %v1135_v8, %v522_v43 }
 0x295   : > { %v577_v25 = vmul.f32 %v576_v40, %v493_v38  ;;  %v531_v55 = vsel %vm528_vm3, %v530_v52, %v526_v50 }
 0x296   : > { %v479_v42 = vadd.f32 %v475_v37, %v417_v22  ;;  %v532_v60 = vmul.f32 %v531_v55, %v490_v56 }
 0x297   : > { %v599_v45 = vpack.c.bf16 %v577_v25, %v562_v24 }
 0x298   : > { %484 = vst.msk [vmem:[#allocation2 + $0x8] sm:$0xff] %vm203_vm4, %v479_v42 }
 0x299   : > { %v609_v49 = vsel %vm203_vm4, %v599_v45, 0 }
 0x29a   : > { %618 = vmatpush.bf16.xpose.msrb.mxu1 %v609_v49 }
 0x29f   : > { %v491_v57 = vld [vmem:[#allocation2 + $0x8] sm:$0xff] }
 0x2a0   : > { %v547_v17 = vmul.f32 %v546_v58, %v491_v57 }
 0x2a1   : > { %747 = vmatmul.msk.bf16.vlgmr.msrb.gmra.mxu1 %vm203_vm4, %v1137_v11 }
 0x2a2   : > { %v579_v61 = vpack.c.bf16 %v547_v17, %v532_v60 }
 0x2a4   : > { %v584_v59 = vsel %vm203_vm4, %v579_v61, 0 }
 0x2a5   : > { %593 = vmatpush.bf16.xpose.msra.mxu3 %v584_v59 }
 0x2ac   : > { %746 = vmatmul.msk.bf16.vlgmr.msra.gmra.mxu3 %vm203_vm4, %v1112_v41 }
 0x31e   : > { %v620_v62 = vpop.f32.mrf.mxu1 }
 0x31f   : > { %625 = vrot.lane.b32.xlu0 %v620_v62, %s928_s23 }
 0x326   : > { %v622_v63 = vpop.f32.mrf.mxu1 }
 0x32f   : > { %v595_v0 = vpop.f32.mrf.mxu3 }
 0x337   : > { %v597_v1 = vpop.f32.mrf.mxu3 }
 0x391   : > { %v626_v2 = vpop.permute.xlu0 %625 }
 0x392   : > { %v628_v41 = vsel %vm203_vm4, %v595_v0, %v626_v2 }
 0x393   : > { %630 = vst.msk [vmem:[%s181_s5] sm:$0xff] %vm629_vm6, %v628_v41 }
 0x394   : > { %871 = shalt.err (!%p868_p5)
}
 0x395   : > { %757 = dma.vmem_to_hbm [thread:$0]  (%p989_p4), %s645_s6, 128, %s647_s7, %s632_s8  }
 0x396 PF: > { %p763_p6 = scmp.ge.s32.totalorder %s922_s17, 2  ;;  %s658_s23 = sand.u32 1, %s902_s12  }
 0x397   : > { %s659_s26 = scalar_lea.sflag [#allocation6], %s658_s23 }
 0x398   : > { %p760_p7 = pnand %p763_p6, %p996_p8 }
 0x39a   : > { %p761_p9 = pneg %p760_p7 }
 0x39c   : > { %897 = dma.done.wait (%p761_p9), %s659_s26, 128  }
 0x39d   : > { %899 = vsyncadd (%p761_p9), %s659_s26, 4294967168  ;;  %s16_s17 = sadd.s32 1, %s922_s17   ;;  %s1216_s12 = smov %s906_s13 }
 0x39e   : > { %p13_p10 = scmp.ge.s32.totalorder %s16_s17, 4   ;;  %s1217_s13 = smov %s910_s14 }
 0x39f   : > { %s1218_s14 = smov %s1002_s25  ;;  %s1219_s15 = smov %s918_s16 }
 0x3a0   : > { %s1220_s16 = smov %s1222_s20  ;;  %15 = sbr.rel (!%p13_p10) target bundleno = 4 (0x4), region = 75 }
 0x3a5   :  { %665 = vsyncpa [#allocation6], 1 }
 0x3a6   :  { %667 = vsyncpa [#allocation6 + $0x1], 1 }

</bundles_post_ra>
